<compile_context>
chip_gen: v6e
topology: v6e:2x2x1
jax: 0.10.0
libtpu: 0.0.40
codegen_flags: <defaults>
</compile_context>

<pallas_src>
import functools
import math

import jax
import jax.numpy as jnp
import numpy as np
from jax.experimental import pallas as pl
from jax.experimental.pallas import tpu as pltpu


def _round_up(x, m):
    return ((x + m - 1) // m) * m


def _cdiv(a, b):
    return (a + b - 1) // b


# ------------------------------- kernel --------------------------------------

def _actor_kernel(st_ref,              # (S_aug, tb)  transposed state (+ ones row)
                  wa_ref,              # (width, S_aug) fused [CPN.fc1 | fc1], biases folded
                  cw2_ref, w2_ref,     # (mid, c_pad), (mid, h_pad)  (cb2/b2 folded in)
                  w3_ref, b3_ref,      # (A, mid), (A, 1)
                  action_ref, actor_input_ref,
                  *, c_pad, compute_dtype):
    # Fused first layer for both branches; the first-layer biases enter through
    # the ones row of st_ref.  Rows c_pad-1 and width-1 of u are a constant 1
    # after relu and carry the folded second-layer biases.
    u = jnp.dot(wa_ref[...], st_ref[...], preferred_element_type=jnp.float32)
    u = jnp.maximum(u, 0.0).astype(compute_dtype)            # (width, tb)

    # CPN branch: rows [0, c_pad) = [relu(state@CW1+cb1) | zeros | 1]
    c = jnp.dot(cw2_ref[...], u[:c_pad, :], preferred_element_type=jnp.float32)
    c = jnp.maximum(c, 0.0)

    # Actor trunk: rows [c_pad, width) = [relu(state@W1+b1) | zeros | 1]
    x = jnp.dot(w2_ref[...], u[c_pad:, :], preferred_element_type=jnp.float32)
    x = jnp.maximum(x, 0.0)

    ai = x + c                                               # (mid, tb) f32
    actor_input_ref[...] = ai

    a = jnp.dot(w3_ref[...], ai.astype(compute_dtype),
                preferred_element_type=jnp.float32) + b3_ref[...]
    action_ref[...] = jnp.tanh(a)


# ------------------------- host-side weight fusion ---------------------------

def prepare_fused_params(p, *, compute_dtype=jnp.bfloat16):
    """Build the transposed/fused/padded weights consumed by the kernel.

    Plain params are (in, out) weights and (1, out) biases (nn.Linear weights
    pre-transposed to (in, out)).
    """
    S, H = p["w1"].shape
    A = p["w3"].shape[1]
    cpn_hidden = p["cw1"].shape[1]           # 400
    mid = p["w2"].shape[1]                   # 16

    c_pad = _round_up(cpn_hidden + 1, 128)   # 512 (room for the bias-carry row)
    h_pad = _round_up(H + 1, 128)            # 128 for hidden_dim=32
    width = c_pad + h_pad
    s_aug = _round_up(S + 1, 8)              # state features + ones row, sublane-aligned

    # Fused first-layer weight, transposed: rows = features, cols = state(+1).
    wa_t = jnp.zeros((width, s_aug), jnp.float32)
    wa_t = wa_t.at[:cpn_hidden, :S].set(p["cw1"].T)
    wa_t = wa_t.at[:cpn_hidden, S].set(p["cb1"][0])     # cb1 folded (ones row)
    wa_t = wa_t.at[c_pad - 1, S].set(1.0)               # constant-1 row (CPN segment)
    wa_t = wa_t.at[c_pad:c_pad + H, :S].set(p["w1"].T)
    wa_t = wa_t.at[c_pad:c_pad + H, S].set(p["b1"][0])  # b1 folded (ones row)
    wa_t = wa_t.at[width - 1, S].set(1.0)               # constant-1 row (actor segment)

    cw2_t = jnp.zeros((mid, c_pad), jnp.float32)
    cw2_t = cw2_t.at[:, :cpn_hidden].set(p["cw2"].T)
    cw2_t = cw2_t.at[:, c_pad - 1].set(p["cb2"][0])     # folded cb2

    w2_t = jnp.zeros((mid, h_pad), jnp.float32)
    w2_t = w2_t.at[:, :H].set(p["w2"].T)
    w2_t = w2_t.at[:, h_pad - 1].set(p["b2"][0])        # folded b2

    return dict(
        wa_t=wa_t.astype(compute_dtype),
        cw2_t=cw2_t.astype(compute_dtype),
        w2_t=w2_t.astype(compute_dtype),
        w3_t=p["w3"].T.astype(compute_dtype),            # (A, mid)
        b3_t=p["b3"].T.astype(jnp.float32),              # (A, 1)
        c_pad=c_pad, h_pad=h_pad, width=width, s_aug=s_aug, mid=mid,
        state_dim=S, action_dim=A, compute_dtype=compute_dtype)


# ------------------------------- wrapper --------------------------------------

def super_lesioned_actor_v0(state, fused, *, max_batch_tile=2048):
    """state: (B, state_dim) f32. fused: output of prepare_fused_params()."""
    B, S = state.shape
    A, mid = fused["action_dim"], fused["mid"]
    c_pad, h_pad, width = fused["c_pad"], fused["h_pad"], fused["width"]
    s_aug = fused["s_aug"]
    cdt = fused["compute_dtype"]

    # ---- batch tiling: lane-axis tiles (multiples of 128), balanced ceil-split,
    #      >= 2 tiles whenever B > 128 so both v7x TensorCores engage.
    n_units = _cdiv(max(B, 1), 128)              # 128-lane groups needed
    max_units = max(1, max_batch_tile // 128)
    n_tiles = _cdiv(n_units, max_units)
    if n_units >= 2:
        n_tiles = max(n_tiles, 2)
    units_per_tile = _cdiv(n_units, n_tiles)
    n_tiles = max(_cdiv(n_units, units_per_tile), 2 if n_units >= 2 else 1)
    tb = units_per_tile * 128
    b_pad = n_tiles * tb

    # ---- feature-major (transposed) state with a ones row (folds b1/cb1).
    st = jnp.zeros((s_aug, b_pad), cdt)
    st = st.at[:S, :B].set(state.T.astype(cdt))
    st = st.at[S, :B].set(1.0)

    kernel = functools.partial(_actor_kernel, c_pad=c_pad, compute_dtype=cdt)
    resident = lambda i: (0, 0)   # constant index_map -> weights stay resident in VMEM

    action_t, actor_input_t = pl.pallas_call(
        kernel,
        out_shape=(jax.ShapeDtypeStruct((A, b_pad), jnp.float32),
                   jax.ShapeDtypeStruct((mid, b_pad), jnp.float32)),
        grid_spec=pltpu.PrefetchScalarGridSpec(
            num_scalar_prefetch=0,
            grid=(n_tiles,),
            in_specs=[
                pl.BlockSpec((s_aug, tb), lambda i: (0, i)),   # state tile (pipelined)
                pl.BlockSpec((width, s_aug), resident),        # fused CW1|W1 (+b folded)
                pl.BlockSpec((mid, c_pad), resident),          # CW2 (+cb2 column)
                pl.BlockSpec((mid, h_pad), resident),          # W2  (+b2 column)
                pl.BlockSpec((A, mid), resident),              # W3
                pl.BlockSpec((A, 1), resident),                # b3
            ],
            out_specs=[
                pl.BlockSpec((A, tb), lambda i: (0, i)),       # action^T   (lane-dense)
                pl.BlockSpec((mid, tb), lambda i: (0, i)),     # actor_in^T (lane-dense)
            ],
        ),
        compiler_params=pltpu.CompilerParams(
            dimension_semantics=("parallel",),      # megacore sharding on v7x
            vmem_limit_bytes=32 * 1024 * 1024,
        ),
    )(st, fused["wa_t"], fused["cw2_t"], fused["w2_t"], fused["w3_t"], fused["b3_t"])

    # back to batch-major
    action = action_t[:, :B].T
    actor_input = actor_input_t[:, :B].T
    return action, actor_input


# ---------------- deterministic parameter construction ----------------

def _xavier_uniform(key, fan_in, fan_out):
    # matches nn.init.xavier_uniform_ on a (out, in) weight; returned as (in, out)
    bound = math.sqrt(6.0 / (fan_in + fan_out))
    return jax.random.uniform(key, (fan_in, fan_out), jnp.float32, -bound, bound)


def _linear_bias(key, fan_in, fan_out):
    # PyTorch default Linear bias init: U(-1/sqrt(fan_in), 1/sqrt(fan_in)); shape (1, out)
    bound = 1.0 / math.sqrt(fan_in)
    return jax.random.uniform(key, (1, fan_out), jnp.float32, -bound, bound)


def make_params(key, state_dim, action_dim, hidden_dim,
                cpn_input_dim=400, cpn_output_dim=16):
    ks = jax.random.split(key, 10)
    return {
        # actor
        "w1": _xavier_uniform(ks[0], state_dim, hidden_dim),
        "b1": _linear_bias(ks[1], state_dim, hidden_dim),
        "w2": _xavier_uniform(ks[2], hidden_dim, 16),
        "b2": _linear_bias(ks[3], hidden_dim, 16),
        "w3": jax.random.uniform(ks[4], (16, action_dim), jnp.float32, -0.003, 0.003),
        "b3": _linear_bias(ks[5], 16, action_dim),
        # CPNv0 (state_dim -> 400 -> 16)
        "cw1": _xavier_uniform(ks[6], state_dim, cpn_input_dim),
        "cb1": _linear_bias(ks[7], state_dim, cpn_input_dim),
        "cw2": _xavier_uniform(ks[8], cpn_input_dim, cpn_output_dim),
        "cb2": _linear_bias(ks[9], cpn_input_dim, cpn_output_dim),
    }


def reference_forward(state, p):
    h = jnp.maximum(state @ p["w1"] + p["b1"], 0.0)
    x = jnp.maximum(h @ p["w2"] + p["b2"], 0.0)
    c = jnp.maximum(state @ p["cw1"] + p["cb1"], 0.0)
    c = jnp.maximum(c @ p["cw2"] + p["cb2"], 0.0)
    actor_input = x + c
    action = jnp.tanh(actor_input @ p["w3"] + p["b3"])
    return action, actor_input


if __name__ == "__main__":
    key = jax.random.PRNGKey(0)
    k_param, k_state = jax.random.split(key)

    batch = 4
    state_dim = 8
    hidden_dim = 32
    action_dim = 4
    # limit is unused in forward(); kept here only for fidelity to __init__
    limit = jnp.ones((action_dim,), jnp.float32)

    params = make_params(k_param, state_dim, action_dim, hidden_dim)
    fused = prepare_fused_params(params)          # bf16 MXU operands by default
    state = jax.random.normal(k_state, (batch, state_dim), jnp.float32)

    action, actor_input = super_lesioned_actor_v0(state, fused)
    jax.block_until_ready((action, actor_input))

    # Reference is pure f32; kernel matmul operands are bf16 (f32 accumulation),
    # so tolerances are loosened accordingly.
    ref_action, ref_actor_input = reference_forward(state, params)
    np.testing.assert_allclose(np.asarray(action), np.asarray(ref_action),
                               rtol=2e-2, atol=2e-2)
    np.testing.assert_allclose(np.asarray(actor_input), np.asarray(ref_actor_input),
                               rtol=2e-2, atol=2e-2)

    print("KERNEL_OK")
</pallas_src>

<mosaic_0001>
module attributes {stable_mosaic.version = 11 : i64} {
  func.func @_actor_kernel(%arg0: i32, %arg1: memref<16x128xbf16, #tpu.memory_space<vmem>>, %arg2: memref<640x16xbf16, #tpu.memory_space<vmem>>, %arg3: memref<16x512xbf16, #tpu.memory_space<vmem>>, %arg4: memref<16x128xbf16, #tpu.memory_space<vmem>>, %arg5: memref<4x16xbf16, #tpu.memory_space<vmem>>, %arg6: memref<4x1xf32, #tpu.memory_space<vmem>>, %arg7: memref<4x128xf32, #tpu.memory_space<vmem>>, %arg8: memref<16x128xf32, #tpu.memory_space<vmem>>) attributes {dimension_semantics = [#tpu.dimension_semantics<parallel>], iteration_bounds = array<i64: 1>, scalar_prefetch = 0 : i64, scratch_operands = 0 : i64, tpu.core_type = #tpu.core_type<tc>, window_params = [{transform_indices = @transform_0, window_bounds = array<i64: 16, 128>}, {pipeline_mode = #tpu.pipeline_mode<synchronous>, transform_indices = @transform_1, window_bounds = array<i64: 640, 16>}, {pipeline_mode = #tpu.pipeline_mode<synchronous>, transform_indices = @transform_2, window_bounds = array<i64: 16, 512>}, {pipeline_mode = #tpu.pipeline_mode<synchronous>, transform_indices = @transform_3, window_bounds = array<i64: 16, 128>}, {pipeline_mode = #tpu.pipeline_mode<synchronous>, transform_indices = @transform_4, window_bounds = array<i64: 4, 16>}, {pipeline_mode = #tpu.pipeline_mode<synchronous>, transform_indices = @transform_5, window_bounds = array<i64: 4, 1>}, {transform_indices = @transform_6, window_bounds = array<i64: 4, 128>}, {transform_indices = @transform_7, window_bounds = array<i64: 16, 128>}]} {
    %c0 = arith.constant 0 : index
    %c0_0 = arith.constant 0 : index
    %0 = vector.load %arg2[%c0, %c0_0] : memref<640x16xbf16, #tpu.memory_space<vmem>>, vector<640x16xbf16>
    %c0_1 = arith.constant 0 : index
    %c0_2 = arith.constant 0 : index
    %1 = vector.load %arg1[%c0_1, %c0_2] : memref<16x128xbf16, #tpu.memory_space<vmem>>, vector<16x128xbf16>
    %cst = arith.constant dense<0.000000e+00> : vector<640x128xf32>
    %2 = tpu.matmul %0, %1, %cst {dimension_numbers = #tpu.dot_dimension_numbers<[1], [0], [0], [1], [0, 0, 1, 1], [], []>} : vector<640x16xbf16>, vector<16x128xbf16>, vector<640x128xf32> -> vector<640x128xf32>
    %cst_3 = arith.constant 0.000000e+00 : f32
    %3 = vector.broadcast %cst_3 : f32 to vector<640x128xf32>
    %4 = arith.maximumf %2, %3 : vector<640x128xf32>
    %5 = arith.truncf %4 : vector<640x128xf32> to vector<640x128xbf16>
    %c0_4 = arith.constant 0 : index
    %c0_5 = arith.constant 0 : index
    %6 = vector.load %arg3[%c0_4, %c0_5] : memref<16x512xbf16, #tpu.memory_space<vmem>>, vector<16x512xbf16>
    %7 = vector.extract_strided_slice %5 {offsets = [0, 0], sizes = [512, 128], strides = [1, 1]} : vector<640x128xbf16> to vector<512x128xbf16>
    %cst_6 = arith.constant dense<0.000000e+00> : vector<16x128xf32>
    %8 = tpu.matmul %6, %7, %cst_6 {dimension_numbers = #tpu.dot_dimension_numbers<[1], [0], [0], [1], [0, 0, 1, 1], [], []>} : vector<16x512xbf16>, vector<512x128xbf16>, vector<16x128xf32> -> vector<16x128xf32>
    %cst_7 = arith.constant 0.000000e+00 : f32
    %9 = vector.broadcast %cst_7 : f32 to vector<16x128xf32>
    %10 = arith.maximumf %8, %9 : vector<16x128xf32>
    %c0_8 = arith.constant 0 : index
    %c0_9 = arith.constant 0 : index
    %11 = vector.load %arg4[%c0_8, %c0_9] : memref<16x128xbf16, #tpu.memory_space<vmem>>, vector<16x128xbf16>
    %12 = vector.extract_strided_slice %5 {offsets = [512, 0], sizes = [128, 128], strides = [1, 1]} : vector<640x128xbf16> to vector<128x128xbf16>
    %cst_10 = arith.constant dense<0.000000e+00> : vector<16x128xf32>
    %13 = tpu.matmul %11, %12, %cst_10 {dimension_numbers = #tpu.dot_dimension_numbers<[1], [0], [0], [1], [0, 0, 1, 1], [], []>} : vector<16x128xbf16>, vector<128x128xbf16>, vector<16x128xf32> -> vector<16x128xf32>
    %cst_11 = arith.constant 0.000000e+00 : f32
    %14 = vector.broadcast %cst_11 : f32 to vector<16x128xf32>
    %15 = arith.maximumf %13, %14 : vector<16x128xf32>
    %16 = arith.addf %15, %10 : vector<16x128xf32>
    %c0_12 = arith.constant 0 : index
    %c0_13 = arith.constant 0 : index
    %17 = vector.load %arg8[%c0_12, %c0_13] : memref<16x128xf32, #tpu.memory_space<vmem>>, vector<16x128xf32>
    tpu.vector_store %arg8[%c0_12, %c0_13], %16 {strides = array<i32>} : memref<16x128xf32, #tpu.memory_space<vmem>>, vector<16x128xf32>,
    %c0_14 = arith.constant 0 : index
    %c0_15 = arith.constant 0 : index
    %18 = vector.load %arg5[%c0_14, %c0_15] : memref<4x16xbf16, #tpu.memory_space<vmem>>, vector<4x16xbf16>
    %19 = arith.truncf %16 : vector<16x128xf32> to vector<16x128xbf16>
    %cst_16 = arith.constant dense<0.000000e+00> : vector<4x128xf32>
    %20 = tpu.matmul %18, %19, %cst_16 {dimension_numbers = #tpu.dot_dimension_numbers<[1], [0], [0], [1], [0, 0, 1, 1], [], []>} : vector<4x16xbf16>, vector<16x128xbf16>, vector<4x128xf32> -> vector<4x128xf32>
    %c0_17 = arith.constant 0 : index
    %c0_18 = arith.constant 0 : index
    %21 = vector.load %arg6[%c0_17, %c0_18] : memref<4x1xf32, #tpu.memory_space<vmem>>, vector<4x1xf32>
    %22 = vector.broadcast %21 : vector<4x1xf32> to vector<4x128xf32>
    %23 = arith.addf %20, %22 : vector<4x128xf32>
    %24 = math.tanh %23 : vector<4x128xf32>
    %c0_19 = arith.constant 0 : index
    %c0_20 = arith.constant 0 : index
    %25 = vector.load %arg7[%c0_19, %c0_20] : memref<4x128xf32, #tpu.memory_space<vmem>>, vector<4x128xf32>
    tpu.vector_store %arg7[%c0_19, %c0_20], %24 {strides = array<i32>} : memref<4x128xf32, #tpu.memory_space<vmem>>, vector<4x128xf32>,
    return
  }
  func.func @transform_0(%arg0: i32) -> (i32, i32) {
    %c0_i32 = arith.constant 0 : i32
    %c0_i32_0 = arith.constant 0 : i32
    return %c0_i32, %arg0 : i32, i32
  }
  func.func @transform_1(%arg0: i32) -> (i32, i32) {
    %c0_i32 = arith.constant 0 : i32
    %c0_i32_0 = arith.constant 0 : i32
    %c0_i32_1 = arith.constant 0 : i32
    return %c0_i32, %c0_i32_0 : i32, i32
  }
  func.func @transform_2(%arg0: i32) -> (i32, i32) {
    %c0_i32 = arith.constant 0 : i32
    %c0_i32_0 = arith.constant 0 : i32
    %c0_i32_1 = arith.constant 0 : i32
    return %c0_i32, %c0_i32_0 : i32, i32
  }
  func.func @transform_3(%arg0: i32) -> (i32, i32) {
    %c0_i32 = arith.constant 0 : i32
    %c0_i32_0 = arith.constant 0 : i32
    %c0_i32_1 = arith.constant 0 : i32
    return %c0_i32, %c0_i32_0 : i32, i32
  }
  func.func @transform_4(%arg0: i32) -> (i32, i32) {
    %c0_i32 = arith.constant 0 : i32
    %c0_i32_0 = arith.constant 0 : i32
    %c0_i32_1 = arith.constant 0 : i32
    return %c0_i32, %c0_i32_0 : i32, i32
  }
  func.func @transform_5(%arg0: i32) -> (i32, i32) {
    %c0_i32 = arith.constant 0 : i32
    %c0_i32_0 = arith.constant 0 : i32
    %c0_i32_1 = arith.constant 0 : i32
    return %c0_i32, %c0_i32_0 : i32, i32
  }
  func.func @transform_6(%arg0: i32) -> (i32, i32) {
    %c0_i32 = arith.constant 0 : i32
    %c0_i32_0 = arith.constant 0 : i32
    return %c0_i32, %arg0 : i32, i32
  }
  func.func @transform_7(%arg0: i32) -> (i32, i32) {
    %c0_i32 = arith.constant 0 : i32
    %c0_i32_0 = arith.constant 0 : i32
    return %c0_i32, %arg0 : i32, i32
  }
}

</mosaic_0001>

<bundles_post_ra>
// kernel: tpu_custom_call.1
= control target key start
LH: loop header
LB: loop body
LE: loop exit
PB: predicated region body
PF: predicated region fallthrough
CT: control target
= control target key end

     0   :  { %13 = vsyncpa [#allocation3], 0  ;;  %vm316_vm0 = vcmask 130048   ;;  %s1890_s0 = inlined_call_operand.vmem [shape: bf16[16,128], index: 0, kind: input, shape index: {}]   ;;  %s1891_s1 = inlined_call_operand.vmem [shape: bf16[640,16], index: 1, kind: input, shape index: {}]   ;;  %s1892_s2 = inlined_call_operand.vmem [shape: bf16[16,512], index: 2, kind: input, shape index: {}]   ;;  %s1893_s3 = inlined_call_operand.vmem [shape: bf16[16,128], index: 3, kind: input, shape index: {}]   ;;  %s1894_s4 = inlined_call_operand.vmem [shape: bf16[4,16], index: 4, kind: input, shape index: {}]   ;;  %s1895_s5 = inlined_call_operand.vmem [shape: f32[4,1], index: 5, kind: input, shape index: {}]   ;;  %s1896_s6 = inlined_call_operand.hbm [shape: f32[4,128], index: 6, kind: output, shape index: {0}]   ;;  %s1897_s7 = inlined_call_operand.hbm [shape: f32[16,128], index: 7, kind: output, shape index: {1}]  }
   0x1   :  { %v1457_v0 = vld [vmem:[%s1890_s0] sm:$0xff]   ;;  %v1459_v2 = vld [vmem:[%s1891_s1 + $0x8] sm:$0xff]   ;;  %v1460_v3 = vld [vmem:[%s1891_s1 + $0x10] sm:$0xff]  }
   0x2   :  { %v1458_v1 = vld [vmem:[%s1891_s1] sm:$0xff]   ;;  %1339 = vmatprep.subr.bf16.mxu0 %v1457_v0  ;;  %1447 = vmatprep.subr.bf16.mxu1 %v1457_v0  ;;  %v1461_v4 = vld [vmem:[%s1891_s1 + $0x18] sm:$0xff]   ;;  %v1463_v6 = vld [vmem:[%s1891_s1 + $0x28] sm:$0xff]  }
   0x3   :  { %1340 = vmatpush3.bf16.msra.mxu0 %v1457_v0  ;;  %1341 = vmatprep.mubr.msk.bf16.mxu0 %vm316_vm0, %v1458_v1  ;;  %v1462_v5 = vld [vmem:[%s1891_s1 + $0x20] sm:$0xff]   ;;  %v1464_v7 = vld [vmem:[%s1891_s1 + $0x30] sm:$0xff]   ;;  %v1465_v9 = vld [vmem:[%s1891_s1 + $0x38] sm:$0xff]  }
   0x4   :  { %1448 = vmatpush3.bf16.msra.mxu1 %v1457_v0  ;;  %v1481_v8 = vld [vmem:[%s1891_s1 + $0xf0] sm:$0xff]   ;;  %v1483_v10 = vld [vmem:[%s1891_s1 + $0xf8] sm:$0xff]   ;;  %v1466_v11 = vld [vmem:[%s1891_s1 + $0x40] sm:$0xff]  }
   0x5   :  { %1401 = vmatprep.mubr.msk.bf16.mxu1 %vm316_vm0, %v1481_v8  ;;  %v1488_v12 = vld [vmem:[%s1891_s1 + $0x100] sm:$0xff]   ;;  %v1489_v13 = vld [vmem:[%s1891_s1 + $0x108] sm:$0xff]   ;;  %v1468_v15 = vld [vmem:[%s1891_s1 + $0x50] sm:$0xff]  }
   0x6   :  { %1342 = vmatmul.mubr.msk.bf16.vlgmr.msra.gmra.mxu0 %vm316_vm0, %v1459_v2  ;;  %v1467_v14 = vld [vmem:[%s1891_s1 + $0x48] sm:$0xff]   ;;  %v1492_v16 = vld [vmem:[%s1891_s1 + $0x110] sm:$0xff]   ;;  %v1493_v17 = vld [vmem:[%s1891_s1 + $0x118] sm:$0xff]  }
   0x7   :  { %1345 = vmatprep.mubr.msk.bf16.mxu0 %vm316_vm0, %v1460_v3  ;;  %1402 = vmatmul.mubr.msk.bf16.vlgmr.msra.gmra.mxu1 %vm316_vm0, %v1483_v10  ;;  %v1469_v18 = vld [vmem:[%s1891_s1 + $0x58] sm:$0xff]   ;;  %v1494_v19 = vld [vmem:[%s1891_s1 + $0x120] sm:$0xff]  }
   0x8   :  { %1405 = vmatprep.mubr.msk.bf16.mxu1 %vm316_vm0, %v1488_v12  ;;  %v1470_v20 = vld [vmem:[%s1891_s1 + $0x60] sm:$0xff]  }
   0xe   :  { %1346 = vmatmul.mubr.msk.bf16.gmra.mxu0 %vm316_vm0, %v1461_v4 }
   0xf   :  { %1349 = vmatprep.mubr.msk.bf16.mxu0 %vm316_vm0, %v1462_v5  ;;  %1406 = vmatmul.mubr.msk.bf16.gmra.mxu1 %vm316_vm0, %v1489_v13 }
  0x10   :  { %1409 = vmatprep.mubr.msk.bf16.mxu1 %vm316_vm0, %v1492_v16 }
  0x16   :  { %1350 = vmatmul.mubr.msk.bf16.gmra.mxu0 %vm316_vm0, %v1463_v6 }
  0x17   :  { %1353 = vmatprep.mubr.msk.bf16.mxu0 %vm316_vm0, %v1464_v7 }
  0x1e   :  { %1354 = vmatmul.mubr.msk.bf16.gmra.mxu0 %vm316_vm0, %v1465_v9 }
  0x1f   :  { %1357 = vmatprep.mubr.msk.bf16.mxu0 %vm316_vm0, %v1466_v11 }
  0x26   :  { %1358 = vmatmul.mubr.msk.bf16.gmra.mxu0 %vm316_vm0, %v1467_v14 }
  0x27   :  { %1361 = vmatprep.mubr.msk.bf16.mxu0 %vm316_vm0, %v1468_v15 }
  0x28   :  { %14 = vsyncpa [#allocation5], 0  ;;  %1410 = vmatmul.mubr.msk.bf16.gmra.mxu1 %vm316_vm0, %v1493_v17  ;;  %v1495_v21 = vld [vmem:[%s1891_s1 + $0x128] sm:$0xff]   ;;  %v1496_v22 = vld [vmem:[%s1891_s1 + $0x130] sm:$0xff]   ;;  %vm1552_vm1 = vmmov 0   ;;  %s1554_s20 = smov [#allocation4]  }
  0x29   :  { %1413 = vmatprep.mubr.msk.bf16.mxu1 %vm316_vm0, %v1494_v19  ;;  %v1471_v23 = vld [vmem:[%s1891_s1 + $0x68] sm:$0xff]   ;;  %v1472_v24 = vld [vmem:[%s1891_s1 + $0x70] sm:$0xff]   ;;  %v1497_v25 = vld [vmem:[%s1891_s1 + $0x138] sm:$0xff]   ;;  %s1141_s21 = sshll.u32 %s1554_s20, 4  ;;  %s1142_s21 = int_to_ptr.vmem [resolvable:$true] %s1141_s21 }
  0x2a   :  { %v1473_v26 = vld [vmem:[%s1891_s1 + $0x78] sm:$0xff]   ;;  %v1474_v27 = vld [vmem:[%s1891_s1 + $0x80] sm:$0xff]   ;;  %v1475_v28 = vld [vmem:[%s1891_s1 + $0x88] sm:$0xff]   ;;  %s1507_s22 = scalar_lea.vmem %s1142_s21, 256  ;;  %p1512_p1 = scmp.lt.s32.totalorder %s1142_s21, %s1142_s21 }
  0x2b   :  { %v1476_v29 = vld [vmem:[%s1891_s1 + $0x90] sm:$0xff]   ;;  %v1477_v30 = vld [vmem:[%s1891_s1 + $0x98] sm:$0xff]   ;;  %v1478_v31 = vld [vmem:[%s1891_s1 + $0xa0] sm:$0xff]   ;;  %p1508_p0 = scmp.ne.s32.totalorder %s1142_s21, %s1507_s22  ;;  %p1513_p2 = scmp.lt.s32.totalorder %s1507_s22, %s1507_s22 }
  0x2c   :  { %v1479_v32 = vld [vmem:[%s1891_s1 + $0xa8] sm:$0xff]   ;;  %v1480_v33 = vld [vmem:[%s1891_s1 + $0xb0] sm:$0xff]   ;;  %v1482_v34 = vld [vmem:[%s1891_s1 + $0xb8] sm:$0xff]  }
  0x2d   :  { %v1484_v35 = vld [vmem:[%s1891_s1 + $0xc0] sm:$0xff]   ;;  %v1485_v36 = vld [vmem:[%s1891_s1 + $0xc8] sm:$0xff]   ;;  %v1486_v37 = vld [vmem:[%s1891_s1 + $0xd0] sm:$0xff]   ;;  %p1514_p3 = por %p1513_p2, %p1512_p1 }
  0x2e   :  { %1362 = vmatmul.mubr.msk.bf16.gmra.mxu0 %vm316_vm0, %v1469_v18  ;;  %v1487_v38 = vld [vmem:[%s1891_s1 + $0xd8] sm:$0xff]   ;;  %v1490_v39 = vld [vmem:[%s1891_s1 + $0xe0] sm:$0xff]   ;;  %v1491_v40 = vld [vmem:[%s1891_s1 + $0xe8] sm:$0xff]  }
  0x2f   :  { %1365 = vmatprep.mubr.msk.bf16.mxu0 %vm316_vm0, %v1470_v20  ;;  %v1500_v41 = vld [vmem:[%s1892_s2 + $0x4] ss:$16 sps:$4 sm:$0xff]   ;;  %p1515_p4 = pnand %p1514_p3, %p1508_p0 }
  0x30   :  { %1414 = vmatmul.mubr.msk.bf16.gmra.mxu1 %vm316_vm0, %v1495_v21 }
  0x31   :  { %1417 = vmatprep.mubr.msk.bf16.mxu1 %vm316_vm0, %v1496_v22 }
  0x36   :  { %1366 = vmatmul.mubr.msk.bf16.gmra.mxu0 %vm316_vm0, %v1471_v23 }
  0x37   :  { %1369 = vmatprep.mubr.msk.bf16.mxu0 %vm316_vm0, %v1472_v24 }
  0x38   :  { %1418 = vmatmul.mubr.msk.bf16.gmra.mxu1 %vm316_vm0, %v1497_v25 }
  0x39   :  { %966 = vmatprep.mubr.bf16.mxu1 %v1500_v41 }
  0x3e   :  { %1370 = vmatmul.mubr.msk.bf16.gmra.mxu0 %vm316_vm0, %v1473_v26 }
  0x3f   :  { %1373 = vmatprep.mubr.msk.bf16.mxu0 %vm316_vm0, %v1474_v27 }
  0x46   :  { %1374 = vmatmul.mubr.msk.bf16.gmra.mxu0 %vm316_vm0, %v1475_v28 }
  0x47   :  { %1377 = vmatprep.mubr.msk.bf16.mxu0 %vm316_vm0, %v1476_v29 }
  0x4e   :  { %1378 = vmatmul.mubr.msk.bf16.gmra.mxu0 %vm316_vm0, %v1477_v30 }
  0x4f   :  { %1381 = vmatprep.mubr.msk.bf16.mxu0 %vm316_vm0, %v1478_v31 }
  0x56   :  { %1382 = vmatmul.mubr.msk.bf16.gmra.mxu0 %vm316_vm0, %v1479_v32 }
  0x57   :  { %1385 = vmatprep.mubr.msk.bf16.mxu0 %vm316_vm0, %v1480_v33 }
  0x5e   :  { %1386 = vmatmul.mubr.msk.bf16.gmra.mxu0 %vm316_vm0, %v1482_v34 }
  0x5f   :  { %1389 = vmatprep.mubr.msk.bf16.mxu0 %vm316_vm0, %v1484_v35 }
  0x66   :  { %1390 = vmatmul.mubr.msk.bf16.gmra.mxu0 %vm316_vm0, %v1485_v36 }
  0x67   :  { %1393 = vmatprep.mubr.msk.bf16.mxu0 %vm316_vm0, %v1486_v37 }
  0x6e   :  { %1394 = vmatmul.mubr.msk.bf16.gmra.mxu0 %vm316_vm0, %v1487_v38 }
  0x6f   :  { %1397 = vmatprep.mubr.msk.bf16.mxu0 %vm316_vm0, %v1490_v39 }
  0x76   :  { %1398 = vmatmul.mubr.msk.bf16.gmra.mxu0 %vm316_vm0, %v1491_v40 }
  0xc6   :  { %v1343_v42 = vpop.f32.mrf.mxu0 }
  0xc7   :  { %v792_v45 = vmax.f32 %v1343_v42, 0.0 }
  0xc8   :  { %v471_v43 = vpop.f32.mrf.mxu0 }
  0xc9   :  { %v790_v48 = vmax.f32 %v471_v43, 0.0 }
  0xca   :  { %v1344_v44 = vpop.f32.mrf.mxu0 }
  0xcb   :  { %v793_v46 = vmax.f32 %v1344_v44, 0.0  ;;  %v1403_v44 = vpop.f32.mrf.mxu1 }
  0xcc   :  { %v474_v47 = vpop.f32.mrf.mxu0 }
  0xcd   :  { %v1764_v49 = vpack.c.bf16 %v793_v46, %v792_v45  ;;  %v791_v50 = vmax.f32 %v474_v47, 0.0 }
  0xce   :  { %v1347_v51 = vpop.f32.mrf.mxu0 }
  0xcf   :  { %v1766_v52 = vpack.c.bf16 %v791_v50, %v790_v48  ;;  %v796_v55 = vmax.f32 %v1347_v51, 0.0 }
  0xd0   :  { %v487_v53 = vpop.f32.mrf.mxu0 }
  0xd1   :  { %v794_v58 = vmax.f32 %v487_v53, 0.0 }
  0xd2   :  { %v1348_v54 = vpop.f32.mrf.mxu0 }
  0xd3   :  { %v797_v56 = vmax.f32 %v1348_v54, 0.0 }
  0xd4   :  { %v490_v57 = vpop.f32.mrf.mxu0 }
  0xd5   :  { %v1768_v59 = vpack.c.bf16 %v797_v56, %v796_v55  ;;  %v795_v60 = vmax.f32 %v490_v57, 0.0 }
  0xd6   :  { %v1351_v61 = vpop.f32.mrf.mxu0 }
  0xd7   :  { %v1770_v62 = vpack.c.bf16 %v795_v60, %v794_v58  ;;  %v800_v45 = vmax.f32 %v1351_v61, 0.0  ;;  %v711_v60 = vpop.f32.mrf.mxu1 }
  0xd8   :  { %v1772_v63 = vpop.f32.mrf.mxu0 }
  0xd9   :  { %v798_v61 = vmax.f32 %v1772_v63, 0.0 }
  0xda   :  { %v1352_v0 = vpop.f32.mrf.mxu0 }
  0xdb   :  { %v801_v37 = vmax.f32 %v1352_v0, 0.0 }
  0xdc   :  { %v1774_v1 = vpop.f32.mrf.mxu0 }
  0xdd   :  { %v875_v53 = vpack.c.bf16 %v801_v37, %v800_v45  ;;  %v799_v54 = vmax.f32 %v1774_v1, 0.0 }
  0xde   :  { %v1355_v2 = vpop.f32.mrf.mxu0 }
  0xdf   :  { %v804_v24 = vmax.f32 %v1355_v2, 0.0 }
  0xe0   :  { %v519_v3 = vpop.f32.mrf.mxu0 }
  0xe1   :  { %v802_v34 = vmax.f32 %v519_v3, 0.0  ;;  %v874_v3 = vpack.c.bf16 %v799_v54, %v798_v61 }
  0xe2   :  { %v1356_v4 = vpop.f32.mrf.mxu0 }
  0xe3   :  { %v805_v20 = vmax.f32 %v1356_v4, 0.0 }
  0xe4   :  { %v522_v5 = vpop.f32.mrf.mxu0 }
  0xe5   :  { %v877_v29 = vpack.c.bf16 %v805_v20, %v804_v24  ;;  %v803_v30 = vmax.f32 %v522_v5, 0.0  ;;  %v852_v24 = vmax.f32 %v1403_v44, 0.0 }
  0xe6   :  { %v1776_v6 = vpop.f32.mrf.mxu0 }
  0xe7   :  { %v876_v38 = vpack.c.bf16 %v803_v30, %v802_v34 }
  0xe8   :  { %v1778_v7 = vpop.f32.mrf.mxu0 }
  0xea   :  { %v1780_v8 = vpop.f32.mrf.mxu0 }
  0xec   :  { %v1782_v9 = vpop.f32.mrf.mxu0 }
  0xee   :  { %v1363_v10 = vpop.f32.mrf.mxu0 }
  0xef   :  { %v812_v2 = vmax.f32 %v1363_v10, 0.0 }
  0xf0   :  { %v1784_v11 = vpop.f32.mrf.mxu0 }
  0xf2   :  { %v1364_v12 = vpop.f32.mrf.mxu0 }
  0xf3   :  { %v813_v56 = vmax.f32 %v1364_v12, 0.0  ;;  %v810_v12 = vmax.f32 %v1784_v11, 0.0  ;;  %v807_v11 = vmax.f32 %v1782_v9, 0.0 }
  0xf4   :  { %v1786_v13 = vpop.f32.mrf.mxu0 }
  0xf5   :  { %v881_v5 = vpack.c.bf16 %v813_v56, %v812_v2  ;;  %v811_v1 = vmax.f32 %v1786_v13, 0.0  ;;  %v808_v13 = vmax.f32 %v1776_v6, 0.0 }
  0xf6   :  { %v1367_v14 = vpop.f32.mrf.mxu0 }
  0xf7   :  { %v816_v36 = vmax.f32 %v1367_v14, 0.0  ;;  %v1404_v14 = vpop.f32.mrf.mxu1  ;;  %v880_v10 = vpack.c.bf16 %v811_v1, %v810_v12 }
  0xf8   :  { %v567_v15 = vpop.f32.mrf.mxu0 }
  0xf9   :  { %v814_v47 = vmax.f32 %v567_v15, 0.0 }
  0xfa   :  { %v1368_v16 = vpop.f32.mrf.mxu0 }
  0xfb   :  { %v817_v32 = vmax.f32 %v1368_v16, 0.0  ;;  %v714_v16 = vpop.f32.mrf.mxu1 }
  0xfc   :  { %v570_v17 = vpop.f32.mrf.mxu0 }
  0xfd   :  { %v883_v40 = vpack.c.bf16 %v817_v32, %v816_v36  ;;  %v815_v41 = vmax.f32 %v570_v17, 0.0  ;;  %v809_v17 = vmax.f32 %v1780_v8, 0.0  ;;  %v806_v8 = vmax.f32 %v1778_v7, 0.0 }
  0xfe   :  { %v1371_v18 = vpop.f32.mrf.mxu0 }
  0xff   :  { %v820_v22 = vmax.f32 %v1371_v18, 0.0  ;;  %v882_v57 = vpack.c.bf16 %v815_v41, %v814_v47  ;;  %v1807_v18 = vpop.f32.mrf.mxu1 }
 0x100   :  { %v583_v19 = vpop.f32.mrf.mxu0 }
 0x101   :  { %v818_v26 = vmax.f32 %v583_v19, 0.0 }
 0x102   :  { %v1372_v21 = vpop.f32.mrf.mxu0 }
 0x103   :  { %v821_v23 = vmax.f32 %v1372_v21, 0.0  ;;  %v879_v21 = vpack.c.bf16 %v809_v17, %v808_v13 }
 0x104   :  { %v586_v25 = vpop.f32.mrf.mxu0 }
 0x105   :  { %v885_v27 = vpack.c.bf16 %v821_v23, %v820_v22  ;;  %v819_v28 = vmax.f32 %v586_v25, 0.0  ;;  %v1816_v22 = vpop.f32.mrf.mxu1  ;;  %v853_v25 = vmax.f32 %v1404_v14, 0.0 }
 0x106   :  { %v1375_v31 = vpop.f32.mrf.mxu0 }
 0x107   :  { %v884_v33 = vpack.c.bf16 %v819_v28, %v818_v26  ;;  %1284 = vmatprep.subr.bf16.mxu1 %v885_v27  ;;  %v824_v42 = vmax.f32 %v1375_v31, 0.0  ;;  %v878_v26 = vpack.c.bf16 %v807_v11, %v806_v8  ;;  %v1822_v6 = vpop.f32.mrf.mxu1  ;;  %v850_v28 = vmax.f32 %v711_v60, 0.0 }
 0x108   :  { %v599_v35 = vpop.f32.mrf.mxu0  ;;  %1285 = vmatpush3.bf16.msra.mxu1 %v877_v29  ;;  %v901_v9 = vpack.c.bf16 %v853_v25, %v852_v24  ;;  %v851_v29 = vmax.f32 %v714_v16, 0.0 }
 0x109   :  { %1286 = vmatprep.subr.bf16.mxu1 %v884_v33  ;;  %v822_v48 = vmax.f32 %v599_v35, 0.0  ;;  %v1828_v7 = vpop.f32.mrf.mxu1 }
 0x10a   :  { %v1376_v39 = vpop.f32.mrf.mxu0  ;;  %v900_v35 = vpack.c.bf16 %v851_v29, %v850_v28 }
 0x10b   :  { %v825_v43 = vmax.f32 %v1376_v39, 0.0 }
 0x10c   :  { %v602_v46 = vpop.f32.mrf.mxu0  ;;  %1287 = vmatpush3.bf16.msra.mxu1 %v876_v38  ;;  %v1834_v38 = vpop.f32.mrf.mxu1 }
 0x10d   :  { %v1788_v50 = vpack.c.bf16 %v825_v43, %v824_v42  ;;  %v823_v51 = vmax.f32 %v602_v46, 0.0  ;;  %1288 = vmatprep.subr.bf16.mxu1 %v883_v40 }
 0x10e   :  { %v1791_v55 = vpop.f32.mrf.mxu0  ;;  %v1838_v42 = vpop.f32.mrf.mxu1 }
 0x10f   :  { %v1793_v58 = vpack.c.bf16 %v823_v51, %v822_v48 }
 0x110   :  { %v1796_v0 = vpop.f32.mrf.mxu0  ;;  %1289 = vmatpush3.bf16.msra.mxu1 %v875_v53  ;;  %v1840_v45 = vpop.f32.mrf.mxu1 }
 0x111   :  { %1290 = vmatprep.subr.bf16.mxu1 %v882_v57 }
 0x112   :  { %v1798_v4 = vpop.f32.mrf.mxu0  ;;  %v1842_v48 = vpop.f32.mrf.mxu1 }
 0x113   :  { %v829_v24 = vmax.f32 %v1798_v4, 0.0 }
 0x114   :  { %v1801_v15 = vpop.f32.mrf.mxu0  ;;  %1291 = vmatpush3.bf16.msra.mxu1 %v874_v3  ;;  %v1844_v54 = vpop.f32.mrf.mxu1 }
 0x115   :  { %1292 = vmatprep.subr.bf16.mxu1 %v881_v5 }
 0x116   :  { %v1804_v63 = vpop.f32.mrf.mxu0  ;;  %v1847_v3 = vpop.f32.mrf.mxu1 }
 0x117   :  { %v832_v5 = vmax.f32 %v1804_v63, 0.0 }
 0x118   :  { %v1809_v19 = vpop.f32.mrf.mxu0  ;;  %1293 = vmatpush3.bf16.msra.mxu1 %v1768_v59  ;;  %v1416_v11 = vpop.f32.mrf.mxu1 }
 0x119   :  { %1294 = vmatprep.subr.bf16.mxu1 %v880_v10 }
 0x11a   :  { %v1813_v20 = vpop.f32.mrf.mxu0 }
 0x11b   :  { %v833_v57 = vmax.f32 %v1813_v20, 0.0  ;;  %v830_v20 = vmax.f32 %v1809_v19, 0.0 }
 0x11c   :  { %v1818_v23 = vpop.f32.mrf.mxu0  ;;  %1295 = vmatpush3.bf16.msra.mxu1 %v1770_v62  ;;  %v1498_v62 = vld [vmem:[%s1892_s2] ss:$16 sps:$4 sm:$0xff]  }
 0x11d   :  { %1296 = vmatprep.subr.bf16.mxu1 %v879_v21  ;;  %v891_v17 = vpack.c.bf16 %v833_v57, %v832_v5  ;;  %v831_v10 = vmax.f32 %v1818_v23, 0.0  ;;  %v858_v57 = vmax.f32 %v1838_v42, 0.0  ;;  %v855_v5 = vmax.f32 %v1828_v7, 0.0 }
 0x11e   :  { %v1387_v59 = vpop.f32.mrf.mxu0 }
 0x11f   :  { %v836_v31 = vmax.f32 %v1387_v59, 0.0  ;;  %v890_v25 = vpack.c.bf16 %v831_v10, %v830_v20 }
 0x120   :  { %v647_v27 = vpop.f32.mrf.mxu0  ;;  %1297 = vmatpush3.bf16.msra.mxu1 %v1764_v49  ;;  %v1503_v49 = vld [vmem:[%s1892_s2 + $0xc] ss:$16 sps:$4 sm:$0xff]  }
 0x121   :  { %1298 = vmatprep.subr.bf16.mxu1 %v878_v26  ;;  %v834_v39 = vmax.f32 %v647_v27, 0.0  ;;  %v762_v26 = vpop.f32.mrf.mxu1  ;;  %v828_v27 = vmax.f32 %v1791_v55, 0.0 }
 0x122   :  { %v1388_v30 = vpop.f32.mrf.mxu0 }
 0x123   :  { %v837_v32 = vmax.f32 %v1388_v30, 0.0  ;;  %v889_v23 = vpack.c.bf16 %v829_v24, %v828_v27  ;;  %v1419_v19 = vpop.f32.mrf.mxu1 }
 0x124   :  { %v650_v33 = vpop.f32.mrf.mxu0  ;;  %1299 = vmatpush3.bf16.msra.mxu1 %v1766_v52 }
 0x125   :  { %v893_v34 = vpack.c.bf16 %v837_v32, %v836_v31  ;;  %1306 = vmatprep.subr.bf16.mxu1 %v901_v9  ;;  %v835_v36 = vmax.f32 %v650_v33, 0.0  ;;  %v827_v9 = vmax.f32 %v1801_v15, 0.0  ;;  %v826_v31 = vmax.f32 %v1796_v0, 0.0  ;;  %v1501_v0 = vld [vmem:[%s1892_s2 + $0x8] ss:$16 sps:$4 sm:$0xff]  }
 0x126   :  { %v1391_v37 = vpop.f32.mrf.mxu0  ;;  %v868_v15 = vmax.f32 %v1419_v19, 0.0 }
 0x127   :  { %967 = vmatmul.mubr.bf16.vlgmr.msra.gmra.mxu1 %v1498_v62  ;;  %v892_v41 = vpack.c.bf16 %v835_v36, %v834_v39  ;;  %v840_v32 = vmax.f32 %v1391_v37, 0.0  ;;  %v888_v4 = vpack.c.bf16 %v827_v9, %v826_v31  ;;  %v1551_v37 = vmov 0.0   ;;  %v1073_v31 = vld [vmem:[%s1894_s4] sm:$0x3] }
 0x128   :  { %v1836_v40 = vpop.f32.mrf.mxu0  ;;  %1307 = vmatpush3.bf16.msra.mxu1 %v893_v34  ;;  %1007 = vmatprep.mubr.bf16.mxu1 %v1503_v49  ;;  %v775_v49 = vpop.f32.mrf.mxu1 }
 0x129   :  { %1308 = vmatprep.subr.bf16.mxu1 %v900_v35  ;;  %v838_v55 = vmax.f32 %v1836_v40, 0.0 }
 0x12a   :  { %v1392_v52 = vpop.f32.mrf.mxu0  ;;  %v1420_v35 = vpop.f32.mrf.mxu1 }
 0x12b   :  { %v841_v29 = vmax.f32 %v1392_v52, 0.0  ;;  %v869_v36 = vmax.f32 %v1420_v35, 0.0 }
 0x12c   :  { %v666_v43 = vpop.f32.mrf.mxu0  ;;  %1309 = vmatpush3.bf16.msra.mxu1 %v892_v41  ;;  %v778_v39 = vpop.f32.mrf.mxu1  ;;  %v866_v41 = vmax.f32 %v775_v49, 0.0 }
 0x12d   :  { %v895_v62 = vpack.c.bf16 %v841_v29, %v840_v32  ;;  %v839_v33 = vmax.f32 %v666_v43, 0.0  ;;  %v909_v52 = vpack.c.bf16 %v869_v36, %v868_v15  ;;  %v867_v40 = vmax.f32 %v778_v39, 0.0 }
 0x12e   :  { %v1395_v44 = vpop.f32.mrf.mxu0  ;;  %v865_v43 = vmax.f32 %v1416_v11, 0.0 }
 0x12f   :  { %v844_v8 = vmax.f32 %v1395_v44, 0.0  ;;  %v894_v34 = vpack.c.bf16 %v839_v33, %v838_v55  ;;  %v908_v44 = vpack.c.bf16 %v867_v40, %v866_v41 }
 0x130   :  { %v679_v46 = vpop.f32.mrf.mxu0 }
 0x131   :  { %v842_v28 = vmax.f32 %v679_v46, 0.0  ;;  %v862_v46 = vmax.f32 %v1847_v3, 0.0 }
 0x132   :  { %v1396_v47 = vpop.f32.mrf.mxu0 }
 0x133   :  { %v845_v13 = vmax.f32 %v1396_v47, 0.0  ;;  %v863_v47 = vmax.f32 %v762_v26, 0.0 }
 0x134   :  { %v682_v51 = vpop.f32.mrf.mxu0 }
 0x135   :  { %v897_v63 = vpack.c.bf16 %v845_v13, %v844_v8  ;;  %v843_v59 = vmax.f32 %v682_v51, 0.0  ;;  %v860_v51 = vmax.f32 %v1834_v38, 0.0  ;;  %v854_v38 = vmax.f32 %v1816_v22, 0.0 }
 0x136   :  { %v1399_v53 = vpop.f32.mrf.mxu0  ;;  %v1553_v22 = vmov 0  }
 0x137   :  { %v848_v61 = vmax.f32 %v1399_v53, 0.0  ;;  %v896_v30 = vpack.c.bf16 %v843_v59, %v842_v28  ;;  %v861_v53 = vmax.f32 %v1840_v45, 0.0  ;;  %v902_v42 = vpack.c.bf16 %v855_v5, %v854_v38  ;;  %1456 = vset.pattern.permute.xlu0 %v1553_v22 }
 0x138   :  { %v695_v56 = vpop.f32.mrf.mxu0 }
 0x139   :  { %v846_v14 = vmax.f32 %v695_v56, 0.0  ;;  %v906_v56 = vpack.c.bf16 %v863_v47, %v862_v46 }
 0x13a   :  { %v1400_v60 = vpop.f32.mrf.mxu0 }
 0x13b   :  { %v849_v2 = vmax.f32 %v1400_v60, 0.0  ;;  %v859_v60 = vmax.f32 %v1842_v48, 0.0  ;;  %v1504_v48 = vld [vmem:[%s1893_s3] sm:$0xff]  }
 0x13c   :  { %v698_v1 = vpop.f32.mrf.mxu0 }
 0x13d   :  { %v899_v12 = vpack.c.bf16 %v849_v2, %v848_v61  ;;  %v847_v16 = vmax.f32 %v698_v1, 0.0  ;;  %v856_v61 = vmax.f32 %v1807_v18, 0.0  ;;  %v857_v2 = vmax.f32 %v1822_v6, 0.0  ;;  %v1075_v18 = vld [vmem:[%s1895_s5] sm:$0xf] }
 0x13e   :  { %v904_v3 = vpack.c.bf16 %v859_v60, %v858_v57  ;;  %1078 = vperm.xlu0 %1456, %v1075_v18  }
 0x13f   :  { %v898_v21 = vpack.c.bf16 %v847_v16, %v846_v14  ;;  %1310 = vmatprep.subr.bf16.mxu1 %v899_v12  ;;  %v903_v45 = vpack.c.bf16 %v857_v2, %v856_v61 }
 0x140   :  { %1311 = vmatpush3.bf16.msra.mxu1 %v891_v17 }
 0x141   :  { %1312 = vmatprep.subr.bf16.mxu1 %v898_v21 }
 0x144   :  { %1313 = vmatpush3.bf16.msra.mxu1 %v890_v25 }
 0x145   :  { %1314 = vmatprep.subr.bf16.mxu1 %v897_v63 }
 0x148   :  { %1315 = vmatpush3.bf16.msra.mxu1 %v889_v23 }
 0x149   :  { %1316 = vmatprep.subr.bf16.mxu1 %v896_v30 }
 0x14c   :  { %1317 = vmatpush3.bf16.msra.mxu1 %v888_v4 }
 0x14d   :  { %1318 = vmatprep.subr.bf16.mxu1 %v895_v62 }
 0x150   :  { %1319 = vmatpush3.bf16.msra.mxu1 %v1788_v50  ;;  %v864_v50 = vmax.f32 %v1844_v54, 0.0  ;;  %v905_v54 = vpack.c.bf16 %v861_v53, %v860_v51 }
 0x151   :  { %1320 = vmatprep.subr.bf16.mxu1 %v894_v34 }
 0x154   :  { %1321 = vmatpush3.bf16.msra.mxu1 %v1793_v58  ;;  %v907_v58 = vpack.c.bf16 %v865_v43, %v864_v50 }
 0x155   :  { %1421 = vmatprep.subr.bf16.mxu1 %v1551_v37 }
 0x157   :  { %1008 = vmatmul.mubr.bf16.vlgmr.msra.gmra.mxu1 %v1501_v0 }
 0x158   :  { %1422 = vmatpush3.bf16.msra.mxu1 %v909_v52  ;;  %1437 = vmatprep.mubr.msk.bf16.mxu1 %vm1552_vm1, %v1551_v37 }
 0x159   :  { %1423 = vmatprep.subr.bf16.mxu1 %v1551_v37 }
 0x15c   :  { %1424 = vmatpush3.bf16.msra.mxu1 %v908_v44 }
 0x15d   :  { %1425 = vmatprep.subr.bf16.mxu1 %v1551_v37 }
 0x160   :  { %1426 = vmatpush3.bf16.msra.mxu1 %v907_v58 }
 0x161   :  { %1427 = vmatprep.subr.bf16.mxu1 %v1551_v37 }
 0x164   :  { %1428 = vmatpush3.bf16.msra.mxu1 %v906_v56 }
 0x165   :  { %1429 = vmatprep.subr.bf16.mxu1 %v1551_v37 }
 0x168   :  { %1430 = vmatpush3.bf16.msra.mxu1 %v905_v54 }
 0x169   :  { %1431 = vmatprep.subr.bf16.mxu1 %v1551_v37 }
 0x16c   :  { %1432 = vmatpush3.bf16.msra.mxu1 %v904_v3 }
 0x16d   :  { %1433 = vmatprep.subr.bf16.mxu1 %v1551_v37 }
 0x170   :  { %1434 = vmatpush3.bf16.msra.mxu1 %v903_v45 }
 0x171   :  { %1435 = vmatprep.subr.bf16.mxu1 %v1551_v37 }
 0x174   :  { %1436 = vmatpush3.bf16.msra.mxu1 %v902_v42 }
 0x175   :  { %1441 = vmatprep.subr.bf16.mxu1 %v1551_v37 }
 0x177   :  { %1438 = vmatmul.mubr.bf16.vlgmr.msra.gmra.mxu1 %v1504_v48 }
 0x178   :  { %1443 = vmatprep.mubr.msk.bf16.mxu1 %vm1552_vm1, %v1551_v37 }
 0x1e7   :  { %v1300_v6 = vpop.f32.mrf.mxu1 }
 0x1e9   :  { %v1301_v7 = vpop.f32.mrf.mxu1 }
 0x1ea   :  { %v1302_v21 = vadd.f32 %v1301_v7, %v1300_v6 }
 0x1eb   :  { %v1303_v1 = vpop.f32.mrf.mxu1 }
 0x1ed   :  { %v1304_v14 = vpop.f32.mrf.mxu1 }
 0x1ee   :  { %v1305_v8 = vadd.f32 %v1304_v14, %v1303_v1 }
 0x217   :  { %v1322_v12 = vpop.f32.mrf.mxu1 }
 0x219   :  { %v1323_v16 = vpop.f32.mrf.mxu1 }
 0x21a   :  { %v1324_v10 = vadd.f32 %v1323_v16, %v1322_v12 }
 0x21b   :  { %v1325_v17 = vpop.f32.mrf.mxu1 }
 0x21c   :  { %v1010_v11 = vadd.f32 %v1324_v10, %v1302_v21 }
 0x21d   :  { %v1326_v13 = vpop.f32.mrf.mxu1 }
 0x21e   :  { %v1327_v20 = vadd.f32 %v1326_v13, %v1325_v17  ;;  %v1016_v25 = vmax.f32 %v1010_v11, 0.0 }
 0x220   :  { %v1013_v63 = vadd.f32 %v1327_v20, %v1305_v8 }
 0x222   :  { %v1017_v23 = vmax.f32 %v1013_v63, 0.0 }
 0x237   :  { %v1060_v24 = vpop.f32.mrf.mxu1 }
 0x238   :  { %v1067_v59 = vmax.f32 %v1060_v24, 0.0 }
 0x239   :  { %v1439_v26 = vpop.f32.mrf.mxu1 }
 0x23a   :  { %v1069_v27 = vadd.f32 %v1067_v59, %v1016_v25 }
 0x23b   :  { %v1063_v28 = vpop.f32.mrf.mxu1 }
 0x23c   :  { %1071 = vst [vmem:[#allocation4] sm:$0xff] %v1069_v27  ;;  %v1068_v9 = vmax.f32 %v1063_v28, 0.0 }
 0x23d   :  { %v1440_v29 = vpop.f32.mrf.mxu1 }
 0x23e   :  { %v1070_v30 = vadd.f32 %v1068_v9, %v1017_v23 }
 0x240   :  { %1072 = vst [vmem:[#allocation4 + $0x8] sm:$0xff] %v1070_v30  ;;  %v1074_v19 = vpack.c.bf16 %v1070_v30, %v1069_v27 }
 0x242   :  { %1442 = vmatpush3.bf16.msra.mxu1 %v1074_v19 }
 0x245   :  { %1444 = vmatmul.mubr.msk.bf16.vlgmr.msra.gmra.mxu1 %vm316_vm0, %v1073_v31 }
 0x246   :  { %1518 = shalt.err (!%p1515_p4)
}
 0x247   :  { %s1555_s23 = smov 128   ;;  %s1556_s24 = smov 8   ;;  %v1079_v32 = vpop.permute.xlu0 %1078 }
 0x248   :  { %1147 = dma.vmem_to_hbm [thread:$0]  %s1142_s21, 256, %s1897_s7, [#allocation5], %s1555_s23, %s1555_s23, %s1556_s24  }
 0x249   :  { %s1557_s4 = smov [#allocation2]  }
 0x24a   :  { %s1132_s27 = sshll.u32 %s1557_s4, 4  ;;  %s1133_s27 = int_to_ptr.vmem [resolvable:$true] %s1132_s27 }
 0x24b   :  { %s1527_s28 = scalar_lea.vmem %s1133_s27, 64  ;;  %p1532_p6 = scmp.lt.s32.totalorder %s1133_s27, %s1133_s27 }
 0x24c   :  { %p1528_p5 = scmp.ne.s32.totalorder %s1133_s27, %s1527_s28  ;;  %p1533_p7 = scmp.lt.s32.totalorder %s1527_s28, %s1527_s28 }
 0x24e   :  { %p1534_p8 = por %p1533_p7, %p1532_p6 }
 0x250   :  { %p1535_p9 = pnand %p1534_p8, %p1528_p5 }
 0x305   :  { %v1118_v4 = vpop.f32.mrf.mxu1 }
 0x306   :  { %v1119_v62 = vadd.f32 %v1118_v4, %v1079_v32 }
 0x307   :  { %v1445_v33 = vpop.f32.mrf.mxu1 }
 0x308   :  { %1505 = vtanh.f32 %v1119_v62 }
 0x309   :  { %v1121_v49 = vpop.f32.mrf.mxu1 }
 0x30b   :  { %v1446_v55 = vpop.f32.mrf.mxu1 }
 0x315   :  { %v1506_v34 = vpop.eup %1505 }
 0x316   :  { %1125 = vst [vmem:[#allocation2] sm:$0xf] %v1506_v34 }
 0x317   :  { %1538 = shalt.err (!%p1535_p9)
}
 0x318   :  { %1135 = dma.vmem_to_hbm [thread:$0]  %s1133_s27, 64, %s1896_s6, [#allocation3]  }
 0x319   :  { %1547 = dma.done.wait [#allocation3], 64  }
 0x31a   :  { %1548 = vsyncadd [#allocation3], 4294967232 }
 0x31b   :  { %1549 = dma.done.wait [#allocation5], 256  }
 0x31c   :  { %1550 = vsyncadd [#allocation5], 4294967040 }
 0x31d   :  { %1154 = vsyncpa [#allocation3], 1 }
 0x31e   :  { %1155 = vsyncpa [#allocation5], 1 }

</bundles_post_ra>
